<compile_context>
chip_gen: v7x
topology: tpu7x:2x2x1
jax: 0.10.0
libtpu: 0.0.40
codegen_flags: <defaults>
</compile_context>

<pallas_src>
from functools import partial

import jax
import jax.numpy as jnp
from jax.experimental import pallas as pl
from jax.experimental.pallas import tpu as pltpu

LANE = 128
SUBLANE = 8


def _round_up(x: int, m: int) -> int:
    return ((x + m - 1) // m) * m


def _elu(x):
    # ELU with alpha=1.0 (PyTorch default).  Single EUP op: the exp branch for
    # large positive x overflows to +inf but is discarded by the where.
    return jnp.where(x > 0, x, jnp.exp(x) - 1.0)


def lobe_kernel(x_ref, w0_ref, b0_ref, w1_ref, b1_ref, w2_ref, b2_ref, o_ref,
                *, output_softmax: bool):
    """One batch tile through the full MLP lobe (matmuls + ELU [+ softmax])."""
    cdt = w0_ref.dtype                       # MXU input dtype (bf16 by default)
    x = x_ref[...].astype(cdt)
    # hidden layer 0
    h = jnp.dot(x, w0_ref[...], preferred_element_type=jnp.float32) + b0_ref[...]
    h = _elu(h)
    # hidden layer 1 (n_hidden_layers = 1)
    h = jnp.dot(h.astype(cdt), w1_ref[...],
                preferred_element_type=jnp.float32) + b1_ref[...]
    h = _elu(h)
    # output projection (lane-padded; padded columns carry bias -1e30 when
    # softmax is on, so they are pre-masked with no extra VPU work here)
    y = jnp.dot(h.astype(cdt), w2_ref[...],
                preferred_element_type=jnp.float32) + b2_ref[...]
    if output_softmax:
        m = jnp.max(y, axis=-1, keepdims=True)
        e = jnp.exp(y - m)
        s = jnp.sum(e, axis=-1, keepdims=True)
        inv = pl.reciprocal(s, approx=True)          # EUP vrcp
        inv = inv * (2.0 - s * inv)                  # one Newton step (VALU slack)
        y = e * inv
    # Store only the real output columns (unpadded, small HBM writeback).
    o_ref[...] = y[:, : o_ref.shape[-1]].astype(o_ref.dtype)


def pad_lobe_params(params, *, output_softmax: bool,
                    weights_dtype=jnp.bfloat16):
    """Zero-pad hidden/output feature dims to multiples of 128 lanes (once).

    Weights are stored in `weights_dtype` (bf16 default, native MXU rate);
    biases stay f32.  When output_softmax is True the padded logit columns
    get bias -1e30 so the in-kernel softmax needs no explicit mask.
    """
    w0, b0, w1, b1, w2, b2 = params
    D, H = w0.shape
    O = w2.shape[1]
    Hp = max(_round_up(H, LANE), LANE)
    Op = max(_round_up(O, LANE), LANE)
    f32 = jnp.float32
    wt = weights_dtype
    w0p = jnp.zeros((D, Hp), f32).at[:, :H].set(w0).astype(wt)
    b0p = jnp.zeros((1, Hp), f32).at[:, :H].set(jnp.reshape(b0, (1, H)))
    w1p = jnp.zeros((Hp, Hp), f32).at[:H, :H].set(w1).astype(wt)
    b1p = jnp.zeros((1, Hp), f32).at[:, :H].set(jnp.reshape(b1, (1, H)))
    w2p = jnp.zeros((Hp, Op), f32).at[:H, :O].set(w2).astype(wt)
    pad_bias = -1e30 if output_softmax else 0.0
    b2p = jnp.full((1, Op), pad_bias, f32).at[:, :O].set(jnp.reshape(b2, (1, O)))
    # TODO(synk): input dim D is left unpadded (padding x per call would add
    # HBM traffic for no MXU benefit at these sizes).
    return (w0p, b0p, w1p, b1p, w2p, b2p)


def lobe_forward(x, padded_params, *, output_softmax: bool, n_valid_out: int,
                 tb: int = 1024):
    """Apply the Lobe MLP to x of shape [batch, input_dim] via one pallas_call."""
    w0, b0, w1, b1, w2, b2 = padded_params
    B, D = x.shape
    Hp = w0.shape[1]
    Op = w2.shape[1]

    # Batch tile: as large as requested, 8-aligned, no bigger than the padded
    # batch.  Force >= 2 grid tiles when the batch allows so the "parallel"
    # axis can shard across v7x's two TensorCores (one extra grid step ~0.35us
    # is negligible on single-TC v5e/v6e).
    B8 = _round_up(B, SUBLANE)
    tb = _round_up(max(SUBLANE, min(tb, B8)), SUBLANE)
    if tb >= B8 and B8 >= 2 * SUBLANE:
        tb = _round_up((B8 + 1) // 2, SUBLANE)
    Bp = _round_up(B8, tb)
    if Bp != B:
        x = jnp.pad(x, ((0, Bp - B), (0, 0)))

    kernel = partial(lobe_kernel, output_softmax=output_softmax)
    # TODO(synk): the six constant-index weight/bias specs could request
    # single buffering (pipeline_mode=pl.Buffered(1)); at Hp=128 in bf16 the
    # VMEM saving is ~100 KB so default pipelining is kept.
    out = pl.pallas_call(
        kernel,
        out_shape=jax.ShapeDtypeStruct((Bp, n_valid_out), jnp.float32),
        grid_spec=pltpu.PrefetchScalarGridSpec(
            num_scalar_prefetch=0,
            grid=(Bp // tb,),
            in_specs=[
                pl.BlockSpec((tb, D), lambda i: (i, 0)),   # activations, batch-tiled
                pl.BlockSpec((D, Hp), lambda i: (0, 0)),   # W0 (resident)
                pl.BlockSpec((1, Hp), lambda i: (0, 0)),   # b0
                pl.BlockSpec((Hp, Hp), lambda i: (0, 0)),  # W1
                pl.BlockSpec((1, Hp), lambda i: (0, 0)),   # b1
                pl.BlockSpec((Hp, Op), lambda i: (0, 0)),  # W2
                pl.BlockSpec((1, Op), lambda i: (0, 0)),   # b2
            ],
            # Unpadded output block (last dim == full array dim, so the
            # (8,128) divisibility rule is satisfied); 16x less writeback
            # than a 128-lane-padded f32 output at output_dim=8.
            out_specs=pl.BlockSpec((tb, n_valid_out), lambda i: (i, 0)),
        ),
        compiler_params=pltpu.CompilerParams(
            dimension_semantics=("parallel",),
            # VMEM planned against v7x's 64 MiB physical: resident weights are
            # ~100 KB (bf16) and activations ~1.2 KB/row, so tb up to several
            # thousand rows fits comfortably inside this 32 MiB scoped limit
            # on every generation (v5e/v6e/v7x).
            vmem_limit_bytes=32 * 1024 * 1024,
        ),
    )(x, w0, b0, w1, b1, w2, b2)
    if Bp != B:
        out = out[:B]
    return out


def _forward_stacked(xs, padded_params, *, output_softmax: bool,
                     n_valid_out: int, tb: int):
    """xs: (N_frames, B, D) stacked list -> (N_frames, B, O). One kernel call."""
    N, B, D = xs.shape
    flat = xs.reshape(N * B, D)
    out = lobe_forward(flat, padded_params, output_softmax=output_softmax,
                       n_valid_out=n_valid_out, tb=tb)
    return out.reshape(N, B, n_valid_out)


class BaseVAMPNetEstimatorPallas:
    """Pallas-backed equivalent of BaseVAMPNetEstimator.forward: applies the
    model's Lobe to each tensor in the input list (one fused, jitted kernel)."""

    def __init__(self, params, output_softmax: bool, tb: int = 1024,
                 weights_dtype=jnp.bfloat16):
        self.output_dim = params[4].shape[1]          # w2: [hidden, output_dim]
        self.output_softmax = output_softmax
        self.padded_params = pad_lobe_params(params,
                                             output_softmax=output_softmax,
                                             weights_dtype=weights_dtype)
        self._forward_jit = jax.jit(partial(
            _forward_stacked, output_softmax=output_softmax,
            n_valid_out=self.output_dim, tb=tb))
        # TODO(synk): score_batch / train_batch / fit / validate are abstract
        # training-loop glue with no forward-pass compute; only forward() here.

    def forward(self, x_list):
        xs = jnp.stack(list(x_list), axis=0)          # (N, B, D)
        outs = self._forward_jit(xs, self.padded_params)
        return tuple(outs[i] for i in range(len(x_list)))


def init_lobe_params(key, input_dim, hidden, output_dim):
    """Deterministic PyTorch-Linear-style init: U(-1/sqrt(fan_in), 1/sqrt(fan_in))."""
    ks = jax.random.split(key, 6)

    def lin(kw, kb, fan_in, fan_out):
        bound = 1.0 / jnp.sqrt(fan_in)
        w = jax.random.uniform(kw, (fan_in, fan_out), jnp.float32, -bound, bound)
        b = jax.random.uniform(kb, (1, fan_out), jnp.float32, -bound, bound)
        return w, b

    w0, b0 = lin(ks[0], ks[1], input_dim, hidden)
    w1, b1 = lin(ks[2], ks[3], hidden, hidden)
    w2, b2 = lin(ks[4], ks[5], hidden, output_dim)
    return (w0, b0, w1, b1, w2, b2)


def _reference_lobe(x, params, output_softmax):
    w0, b0, w1, b1, w2, b2 = params

    def elu(v):
        return jnp.where(v > 0, v, jnp.expm1(v))

    h = elu(x @ w0 + b0)
    h = elu(h @ w1 + b1)
    y = h @ w2 + b2
    if output_softmax:
        y = jax.nn.softmax(y, axis=-1)
    return y


if __name__ == "__main__":
    # Small shapes consistent with the module:
    #   input_dim=16, hidden_layer_width=32, output_dim=8, n_hidden_layers=1
    #   batch=16, output_softmax=True
    input_dim, hidden, output_dim = 16, 32, 8
    batch = 16

    key = jax.random.PRNGKey(0)
    kp, kx0, kx1 = jax.random.split(key, 3)
    params = init_lobe_params(kp, input_dim, hidden, output_dim)

    x_t = jax.random.normal(kx0, (batch, input_dim), jnp.float32)
    x_tau = jax.random.normal(kx1, (batch, input_dim), jnp.float32)

    # Default estimator: bf16 weights on the MXU path, f32 accumulation.
    estimator = BaseVAMPNetEstimatorPallas(params, output_softmax=True)
    out_t, out_tau = estimator.forward([x_t, x_tau])
    jax.block_until_ready((out_t, out_tau))

    ref_t = _reference_lobe(x_t, params, True)
    ref_tau = _reference_lobe(x_tau, params, True)
    assert out_t.shape == (batch, output_dim)
    assert out_tau.shape == (batch, output_dim)
    # bf16 matmul inputs -> loose tolerance against the f32 reference.
    assert jnp.allclose(out_t, ref_t, atol=2e-2)
    assert jnp.allclose(out_tau, ref_tau, atol=2e-2)
    # Newton-refined reciprocal: softmax rows sum to ~exactly 1.
    assert jnp.allclose(jnp.sum(out_t, axis=-1), 1.0, atol=1e-3)
    assert jnp.allclose(jnp.sum(out_tau, axis=-1), 1.0, atol=1e-3)

    # f32-weight path: tight numerical check of the same kernel.
    estimator32 = BaseVAMPNetEstimatorPallas(params, output_softmax=True,
                                             weights_dtype=jnp.float32)
    o32_t, o32_tau = estimator32.forward([x_t, x_tau])
    jax.block_until_ready((o32_t, o32_tau))
    assert jnp.allclose(o32_t, ref_t, rtol=2e-3, atol=2e-3)
    assert jnp.allclose(o32_tau, ref_tau, rtol=2e-3, atol=2e-3)

    print("KERNEL_OK")
</pallas_src>

<mosaic_0001>
module attributes {stable_mosaic.version = 11 : i64} {
  func.func @lobe_kernel(%arg0: i32, %arg1: memref<16x16xf32, #tpu.memory_space<vmem>>, %arg2: memref<16x128xbf16, #tpu.memory_space<vmem>>, %arg3: memref<1x128xf32, #tpu.memory_space<vmem>>, %arg4: memref<128x128xbf16, #tpu.memory_space<vmem>>, %arg5: memref<1x128xf32, #tpu.memory_space<vmem>>, %arg6: memref<128x128xbf16, #tpu.memory_space<vmem>>, %arg7: memref<1x128xf32, #tpu.memory_space<vmem>>, %arg8: memref<16x8xf32, #tpu.memory_space<vmem>>) attributes {dimension_semantics = [#tpu.dimension_semantics<parallel>], iteration_bounds = array<i64: 2>, scalar_prefetch = 0 : i64, scratch_operands = 0 : i64, tpu.core_type = #tpu.core_type<tc>, window_params = [{transform_indices = @transform_0, window_bounds = array<i64: 16, 16>}, {pipeline_mode = #tpu.pipeline_mode<synchronous>, transform_indices = @transform_1, window_bounds = array<i64: 16, 128>}, {pipeline_mode = #tpu.pipeline_mode<synchronous>, transform_indices = @transform_2, window_bounds = array<i64: 1, 128>}, {pipeline_mode = #tpu.pipeline_mode<synchronous>, transform_indices = @transform_3, window_bounds = array<i64: 128, 128>}, {pipeline_mode = #tpu.pipeline_mode<synchronous>, transform_indices = @transform_4, window_bounds = array<i64: 1, 128>}, {pipeline_mode = #tpu.pipeline_mode<synchronous>, transform_indices = @transform_5, window_bounds = array<i64: 128, 128>}, {pipeline_mode = #tpu.pipeline_mode<synchronous>, transform_indices = @transform_6, window_bounds = array<i64: 1, 128>}, {transform_indices = @transform_7, window_bounds = array<i64: 16, 8>}]} {
    %c0 = arith.constant 0 : index
    %c0_0 = arith.constant 0 : index
    %0 = vector.load %arg1[%c0, %c0_0] : memref<16x16xf32, #tpu.memory_space<vmem>>, vector<16x16xf32>
    %1 = arith.truncf %0 : vector<16x16xf32> to vector<16x16xbf16>
    %c0_1 = arith.constant 0 : index
    %c0_2 = arith.constant 0 : index
    %2 = vector.load %arg2[%c0_1, %c0_2] : memref<16x128xbf16, #tpu.memory_space<vmem>>, vector<16x128xbf16>
    %cst = arith.constant dense<0.000000e+00> : vector<16x128xf32>
    %3 = tpu.matmul %1, %2, %cst {dimension_numbers = #tpu.dot_dimension_numbers<[1], [0], [0], [1], [0, 0, 1, 1], [], []>} : vector<16x16xbf16>, vector<16x128xbf16>, vector<16x128xf32> -> vector<16x128xf32>
    %c0_3 = arith.constant 0 : index
    %c0_4 = arith.constant 0 : index
    %4 = vector.load %arg3[%c0_3, %c0_4] : memref<1x128xf32, #tpu.memory_space<vmem>>, vector<1x128xf32>
    %5 = vector.broadcast %4 : vector<1x128xf32> to vector<16x128xf32>
    %6 = arith.addf %3, %5 : vector<16x128xf32>
    %cst_5 = arith.constant 0.000000e+00 : f32
    %7 = vector.broadcast %cst_5 : f32 to vector<16x128xf32>
    %8 = arith.cmpf ogt, %6, %7 : vector<16x128xf32>
    %9 = math.exp %6 : vector<16x128xf32>
    %cst_6 = arith.constant 1.000000e+00 : f32
    %10 = vector.broadcast %cst_6 : f32 to vector<16x128xf32>
    %11 = arith.subf %9, %10 : vector<16x128xf32>
    %12 = arith.select %8, %6, %11 : vector<16x128xi1>, vector<16x128xf32>
    %13 = arith.truncf %12 : vector<16x128xf32> to vector<16x128xbf16>
    %c0_7 = arith.constant 0 : index
    %c0_8 = arith.constant 0 : index
    %14 = vector.load %arg4[%c0_7, %c0_8] : memref<128x128xbf16, #tpu.memory_space<vmem>>, vector<128x128xbf16>
    %cst_9 = arith.constant dense<0.000000e+00> : vector<16x128xf32>
    %15 = tpu.matmul %13, %14, %cst_9 {dimension_numbers = #tpu.dot_dimension_numbers<[1], [0], [0], [1], [0, 0, 1, 1], [], []>} : vector<16x128xbf16>, vector<128x128xbf16>, vector<16x128xf32> -> vector<16x128xf32>
    %c0_10 = arith.constant 0 : index
    %c0_11 = arith.constant 0 : index
    %16 = vector.load %arg5[%c0_10, %c0_11] : memref<1x128xf32, #tpu.memory_space<vmem>>, vector<1x128xf32>
    %17 = vector.broadcast %16 : vector<1x128xf32> to vector<16x128xf32>
    %18 = arith.addf %15, %17 : vector<16x128xf32>
    %cst_12 = arith.constant 0.000000e+00 : f32
    %19 = vector.broadcast %cst_12 : f32 to vector<16x128xf32>
    %20 = arith.cmpf ogt, %18, %19 : vector<16x128xf32>
    %21 = math.exp %18 : vector<16x128xf32>
    %cst_13 = arith.constant 1.000000e+00 : f32
    %22 = vector.broadcast %cst_13 : f32 to vector<16x128xf32>
    %23 = arith.subf %21, %22 : vector<16x128xf32>
    %24 = arith.select %20, %18, %23 : vector<16x128xi1>, vector<16x128xf32>
    %25 = arith.truncf %24 : vector<16x128xf32> to vector<16x128xbf16>
    %c0_14 = arith.constant 0 : index
    %c0_15 = arith.constant 0 : index
    %26 = vector.load %arg6[%c0_14, %c0_15] : memref<128x128xbf16, #tpu.memory_space<vmem>>, vector<128x128xbf16>
    %cst_16 = arith.constant dense<0.000000e+00> : vector<16x128xf32>
    %27 = tpu.matmul %25, %26, %cst_16 {dimension_numbers = #tpu.dot_dimension_numbers<[1], [0], [0], [1], [0, 0, 1, 1], [], []>} : vector<16x128xbf16>, vector<128x128xbf16>, vector<16x128xf32> -> vector<16x128xf32>
    %c0_17 = arith.constant 0 : index
    %c0_18 = arith.constant 0 : index
    %28 = vector.load %arg7[%c0_17, %c0_18] : memref<1x128xf32, #tpu.memory_space<vmem>>, vector<1x128xf32>
    %29 = vector.broadcast %28 : vector<1x128xf32> to vector<16x128xf32>
    %30 = arith.addf %27, %29 : vector<16x128xf32>
    %cst_19 = arith.constant dense<0xFF800000> : vector<16xf32>
    %31 = vector.multi_reduction <maximumf>, %30, %cst_19 [1] : vector<16x128xf32> to vector<16xf32>
    %32 = vector.shape_cast %31 : vector<16xf32> to vector<16x1xf32>
    %33 = vector.broadcast %32 : vector<16x1xf32> to vector<16x128xf32>
    %34 = arith.subf %30, %33 : vector<16x128xf32>
    %35 = math.exp %34 : vector<16x128xf32>
    %cst_20 = arith.constant dense<0.000000e+00> : vector<16xf32>
    %36 = vector.multi_reduction <add>, %35, %cst_20 [1] : vector<16x128xf32> to vector<16xf32>
    %37 = vector.shape_cast %36 : vector<16xf32> to vector<16x1xf32>
    %38 = tpu.reciprocal %37 {approx = true} : vector<16x1xf32> -> vector<16x1xf32>
    %39 = arith.mulf %37, %38 : vector<16x1xf32>
    %cst_21 = arith.constant 2.000000e+00 : f32
    %40 = vector.broadcast %cst_21 : f32 to vector<16x1xf32>
    %41 = arith.subf %40, %39 : vector<16x1xf32>
    %42 = arith.mulf %38, %41 : vector<16x1xf32>
    %43 = vector.broadcast %42 : vector<16x1xf32> to vector<16x128xf32>
    %44 = arith.mulf %35, %43 : vector<16x128xf32>
    %45 = vector.extract_strided_slice %44 {offsets = [0, 0], sizes = [16, 8], strides = [1, 1]} : vector<16x128xf32> to vector<16x8xf32>
    %c0_22 = arith.constant 0 : index
    %c0_23 = arith.constant 0 : index
    %46 = vector.load %arg8[%c0_22, %c0_23] : memref<16x8xf32, #tpu.memory_space<vmem>>, vector<16x8xf32>
    tpu.vector_store %arg8[%c0_22, %c0_23], %45 {strides = array<i32>} : memref<16x8xf32, #tpu.memory_space<vmem>>, vector<16x8xf32>,
    return
  }
  func.func @transform_0(%arg0: i32) -> (i32, i32) {
    %c0_i32 = arith.constant 0 : i32
    %c0_i32_0 = arith.constant 0 : i32
    return %arg0, %c0_i32 : i32, i32
  }
  func.func @transform_1(%arg0: i32) -> (i32, i32) {
    %c0_i32 = arith.constant 0 : i32
    %c0_i32_0 = arith.constant 0 : i32
    %c0_i32_1 = arith.constant 0 : i32
    return %c0_i32, %c0_i32_0 : i32, i32
  }
  func.func @transform_2(%arg0: i32) -> (i32, i32) {
    %c0_i32 = arith.constant 0 : i32
    %c0_i32_0 = arith.constant 0 : i32
    %c0_i32_1 = arith.constant 0 : i32
    return %c0_i32, %c0_i32_0 : i32, i32
  }
  func.func @transform_3(%arg0: i32) -> (i32, i32) {
    %c0_i32 = arith.constant 0 : i32
    %c0_i32_0 = arith.constant 0 : i32
    %c0_i32_1 = arith.constant 0 : i32
    return %c0_i32, %c0_i32_0 : i32, i32
  }
  func.func @transform_4(%arg0: i32) -> (i32, i32) {
    %c0_i32 = arith.constant 0 : i32
    %c0_i32_0 = arith.constant 0 : i32
    %c0_i32_1 = arith.constant 0 : i32
    return %c0_i32, %c0_i32_0 : i32, i32
  }
  func.func @transform_5(%arg0: i32) -> (i32, i32) {
    %c0_i32 = arith.constant 0 : i32
    %c0_i32_0 = arith.constant 0 : i32
    %c0_i32_1 = arith.constant 0 : i32
    return %c0_i32, %c0_i32_0 : i32, i32
  }
  func.func @transform_6(%arg0: i32) -> (i32, i32) {
    %c0_i32 = arith.constant 0 : i32
    %c0_i32_0 = arith.constant 0 : i32
    %c0_i32_1 = arith.constant 0 : i32
    return %c0_i32, %c0_i32_0 : i32, i32
  }
  func.func @transform_7(%arg0: i32) -> (i32, i32) {
    %c0_i32 = arith.constant 0 : i32
    %c0_i32_0 = arith.constant 0 : i32
    return %arg0, %c0_i32 : i32, i32
  }
}

</mosaic_0001>

<bundles_post_ra>
// kernel: _forward_stacked.1
= control target key start
LH: loop header
LB: loop body
LE: loop exit
PB: predicated region body
PF: predicated region fallthrough
CT: control target
= control target key end

     0   :  { %12 = vsyncpa [#allocation3], 0  ;;  %s1457_s0 = inlined_call_operand.hbm [shape: f32[32,16], index: 0, kind: input, shape index: {}]   ;;  %s1458_s1 = inlined_call_operand.hbm [shape: bf16[16,128], index: 1, kind: input, shape index: {}]   ;;  %s1459_s2 = inlined_call_operand.vmem [shape: f32[1,128], index: 2, kind: input, shape index: {}]   ;;  %s1460_s3 = inlined_call_operand.hbm [shape: bf16[128,128], index: 3, kind: input, shape index: {}]   ;;  %s1461_s4 = inlined_call_operand.vmem [shape: f32[1,128], index: 4, kind: input, shape index: {}]   ;;  %s1462_s5 = inlined_call_operand.hbm [shape: bf16[128,128], index: 5, kind: input, shape index: {}]   ;;  %s1463_s6 = inlined_call_operand.vmem [shape: f32[1,128], index: 6, kind: input, shape index: {}]   ;;  %s1464_s7 = inlined_call_operand.vmem [shape: f32[32,8], index: 7, kind: output, shape index: {}]  }
   0x1   :  { %14 = vsyncpa [#allocation3 + $0x1], 0 }
   0x2   :  { %15 = vsyncpa [#allocation5], 0 }
   0x3   :  { %16 = vsyncpa [#allocation8], 0  ;;  %s1206_s24 = smov 0   ;;  %s1208_s25 = smov 0  }
   0x4   :  { %s1210_s26 = smov 0   ;;  %s1212_s27 = smov 0  }
   0x5 LB: > { %s778_s28 = sadd.s32 4294967295, %s1154_s27   ;;  %p42_p0 = scmp.ne.s32.totalorder %s1146_s25, %s1142_s24  ;;  %s1154_s27 = sphi %s1212_s27, %s1481_s27   ;;  %s1150_s26 = sphi %s1210_s26, %s1480_s26   ;;  %s1146_s25 = sphi %s1208_s25, %s1479_s25   ;;  %s1142_s24 = sphi %s1206_s24, %s1478_s24  }
   0x6   : > { %p1228_p1 = scmp.eq.s32.totalorder %s778_s28, 0  ;;  %p780_p2 = scmp.ge.s32.totalorder %s1154_s27, 1 }
   0x7   : > { %p205_p3 = scmp.lt.s32.totalorder %s1154_s27, 3  ;;  %s1156_s9 = smov [#allocation4]  }
   0x8   : > { %s1469_s29 = scalar_select %p1228_p1, 1, 0 }
   0x9   : > { %p1236_p4 = por %p1228_p1, %p42_p0  ;;  %p1240_p5 = pnand %p780_p2, %p205_p3 }
   0xa   : > { %s217_s10 = sshll.u32 %s1156_s9, 4  ;;  %s1157_s12 = smov [#allocation6]   ;;  %s1244_s10 = int_to_ptr.vmem [resolvable:$true] %s217_s10 }
   0xb   : > { %s1470_s30 = scalar_select %p1236_p4, 1, 0 }
   0xc   : > { %s1471_s8 = scalar_select %p1240_p5, 1, 0 }
   0xd   : > { %p903_p6 = pneg %p1240_p5  ;;  %s233_s13 = sshll.u32 %s1157_s12, 4  ;;  %s1254_s13 = int_to_ptr.vmem [resolvable:$true] %s233_s13 }
   0xe   : > { %s1158_s14 = smov [#allocation7]   ;;  %s998_s18 = scalar_lea.hbm %s1458_s1, 128 }
   0xf   : > { %p1250_p7 = pnand %p903_p6, %p1228_p1  ;;  %s1256_s15 = sshll.u32 %s1158_s14, 4  ;;  %s250_s15 = int_to_ptr.vmem [resolvable:$true] %s1256_s15 }
  0x10   : > { %p999_p8 = scmp.ne.s32.totalorder %s1458_s1, %s998_s18  ;;  %p1005_p12 = scmp.lt.u32.totalorder %s998_s18, %s1458_s1 }
  0x11   : > { %p1266_p9 = pneg %p1250_p7 }
  0x13   : > { %p1001_p10 = pnand %p1266_p9, %p999_p8 }
  0x15   : > { %p1002_p11 = pneg %p1001_p10 }
  0x17   : > { %p1007_p13 = pnand %p1005_p12, %p1002_p11 }
  0x19   : > { %1010 = shalt.err (!%p1007_p13)
}
  0x1a   : > { %s1011_s24 = scalar_lea.vmem %s1244_s10, 128  ;;  %p1019_p6 = scmp.lt.s32.totalorder %s1244_s10, %s1244_s10 }
  0x1b   : > { %p1012_p0 = scmp.ne.s32.totalorder %s1244_s10, %s1011_s24  ;;  %p1020_p1 = scmp.lt.s32.totalorder %s1011_s24, %s1011_s24 }
  0x1d   : > { %p1014_p2 = pnand %p1012_p0, %p1266_p9  ;;  %p1021_p8 = por %p1020_p1, %p1019_p6 }
  0x1f   : > { %p1015_p3 = pneg %p1014_p2 }
  0x21   : > { %p1022_p10 = pnand %p1021_p8, %p1015_p3 }
  0x23   : > { %1025 = shalt.err (!%p1022_p10)
}
  0x24   : > { %s1159_s9 = smov 64   ;;  %s1160_s12 = smov 4  }
  0x25   : > { %906 = dma.hbm_to_vmem [thread:$0]  (!%p1250_p7), %s1458_s1, 128, %s1244_s10, [#allocation5], %s1159_s9, %s1159_s9, %s1160_s12  }
  0x26   : > { %s1026_s19 = scalar_lea.hbm %s1460_s3, 1024 }
  0x27   : > { %p1027_p1 = scmp.ne.s32.totalorder %s1460_s3, %s1026_s19  ;;  %p1033_p13 = scmp.lt.u32.totalorder %s1026_s19, %s1460_s3 }
  0x29   : > { %p1029_p11 = pnand %p1027_p1, %p1266_p9 }
  0x2b   : > { %p1030_p12 = pneg %p1029_p11 }
  0x2d   : > { %p1035_p0 = pnand %p1033_p13, %p1030_p12 }
  0x2f   : > { %1038 = shalt.err (!%p1035_p0)
}
  0x30   : > { %s1039_s10 = scalar_lea.vmem %s1254_s13, 1024  ;;  %p1047_p8 = scmp.lt.s32.totalorder %s1254_s13, %s1254_s13 }
  0x31   : > { %p1040_p2 = scmp.ne.s32.totalorder %s1254_s13, %s1039_s10  ;;  %p1048_p10 = scmp.lt.s32.totalorder %s1039_s10, %s1039_s10 }
  0x33   : > { %p1042_p3 = pnand %p1040_p2, %p1266_p9  ;;  %p1049_p1 = por %p1048_p10, %p1047_p8 }
  0x35   : > { %p1043_p6 = pneg %p1042_p3 }
  0x37   : > { %p1050_p11 = pnand %p1049_p1, %p1043_p6 }
  0x39   : > { %1053 = shalt.err (!%p1050_p11)
}
  0x3a   : > { %909 = dma.hbm_to_vmem [thread:$0]  (!%p1250_p7), %s1460_s3, 1024, %s1254_s13, [#allocation5], %s1159_s9, %s1159_s9, %s1160_s12  }
  0x3b   : > { %s1054_s19 = scalar_lea.hbm %s1462_s5, 1024 }
  0x3c   : > { %p1055_p12 = scmp.ne.s32.totalorder %s1462_s5, %s1054_s19  ;;  %p1061_p2 = scmp.lt.u32.totalorder %s1054_s19, %s1462_s5 }
  0x3e   : > { %p1057_p13 = pnand %p1055_p12, %p1266_p9 }
  0x40   : > { %p1058_p0 = pneg %p1057_p13 }
  0x42   : > { %p1063_p3 = pnand %p1061_p2, %p1058_p0 }
  0x44   : > { %1066 = shalt.err (!%p1063_p3)
}
  0x45   : > { %s1067_s10 = scalar_lea.vmem %s250_s15, 1024  ;;  %p1075_p1 = scmp.lt.s32.totalorder %s250_s15, %s250_s15 }
  0x46   : > { %p1068_p6 = scmp.ne.s32.totalorder %s250_s15, %s1067_s10  ;;  %p1076_p11 = scmp.lt.s32.totalorder %s1067_s10, %s1067_s10 }
  0x48   : > { %p1070_p8 = pnand %p1068_p6, %p1266_p9  ;;  %p1077_p4 = por %p1076_p11, %p1075_p1 }
  0x4a   : > { %p1071_p10 = pneg %p1070_p8 }
  0x4c   : > { %p1078_p5 = pnand %p1077_p4, %p1071_p10 }
  0x4e   : > { %1081 = shalt.err (!%p1078_p5)
}
  0x4f   : > { %912 = dma.hbm_to_vmem [thread:$0]  (!%p1250_p7), %s1462_s5, 1024, %s250_s15, [#allocation8], %s1159_s9, %s1159_s9, %s1160_s12  }
  0x50   : > { %s1339_s21 = sadd.s32 1, %s1154_s27   ;;  %s29_s16 = sadd.s32 1, %s1150_s26 }
  0x51   : > { %s26_s11 = ssub.s32 %s1154_s27, %s1339_s21  ;;  %p36_p5 = scmp.ne.s32.totalorder %s1150_s26, %s1146_s25 }
  0x52   : > { %p27_p4 = scmp.eq.s32.totalorder %s26_s11, 0  ;;  %p37_p9 = scmp.eq.s32.totalorder %s1154_s27, 0 }
  0x53   : > { %p920_p12 = scmp.lt.s32.totalorder %s1154_s27, 2  ;;  %s266_s18 = sand.u32 1, %s1150_s26  }
  0x54   : > { %s1349_s17 = scalar_select %p27_p4, %s1150_s26, %s29_s16  }
  0x55   : > { %p38_p13 = por %p37_p9, %p36_p5  ;;  %s785_s19 = sshll.u32 %s266_s18, 4 }
  0x56   : > { %s822_s20 = sshll.u32 %s1154_s27, 8  ;;  %s270_s15 = scalar_lea.vmem [#allocation2], %s785_s19 }
  0x57   : > { %s1356_s24 = scalar_lea.hbm %s1457_s0, %s822_s20  ;;  %s277_s9 = sshll.u32 %s270_s15, 4  ;;  %s1358_s9 = int_to_ptr.vmem [resolvable:$true] %s277_s9 }
  0x58   : > { %p1360_p7 = pnand %p920_p12, %p38_p13  ;;  %s1364_s10 = scalar_lea.sflag [#allocation3], %s266_s18 }
  0x59   : > { %s1082_s13 = scalar_lea.hbm %s1356_s24, 256  ;;  %s1087_s16 = scalar_lea.hbm %s1457_s0, 512 }
  0x5a   : > { %p1083_p0 = scmp.ne.s32.totalorder %s1356_s24, %s1082_s13  ;;  %p1084_p2 = pneg %p1360_p7 }
  0x5b   : > { %p1088_p8 = scmp.lt.u32.totalorder %s1356_s24, %s1457_s0  ;;  %p1089_p10 = scmp.lt.u32.totalorder %s1087_s16, %s1082_s13 }
  0x5c   : > { %p1085_p3 = pnand %p1084_p2, %p1083_p0  ;;  %p1091_p11 = scmp.lt.u32.totalorder %s1082_s13, %s1356_s24 }
  0x5d   : > { %p1090_p1 = por %p1089_p10, %p1088_p8 }
  0x5e   : > { %p1086_p6 = pneg %p1085_p3 }
  0x5f   : > { %p1092_p4 = por %p1091_p11, %p1090_p1 }
  0x61   : > { %p1093_p5 = pnand %p1092_p4, %p1086_p6 }
  0x63   : > { %1096 = shalt.err (!%p1093_p5)
}
  0x64   : > { %s1097_s18 = scalar_lea.vmem %s1358_s9, 256  ;;  %s1161_s22 = smov [#allocation2]  }
  0x65   : > { %p1098_p9 = scmp.ne.s32.totalorder %s1358_s9, %s1097_s18  ;;  %s1102_s23 = sshll.u32 %s1161_s22, 4  ;;  %s1103_s23 = int_to_ptr.vmem [resolvable:$false] %s1102_s23 }
  0x66   : > { %s1104_s15 = scalar_lea.vmem %s1103_s23, 512  ;;  %p1105_p0 = scmp.lt.s32.totalorder %s1358_s9, %s1103_s23 }
  0x67   : > { %p1100_p12 = pnand %p1098_p9, %p1084_p2  ;;  %p1106_p3 = scmp.lt.s32.totalorder %s1104_s15, %s1097_s18 }
  0x69   : > { %p1101_p13 = pneg %p1100_p12  ;;  %p1107_p8 = por %p1106_p3, %p1105_p0 }
  0x6b   : > { %p1108_p10 = pnand %p1107_p8, %p1101_p13 }
  0x6d   : > { %1111 = shalt.err (!%p1108_p10)
}
  0x6e   : > { %s1162_s13 = smov 128   ;;  %s1163_s14 = smov 8  }
  0x6f   : > { %916 = dma.hbm_to_vmem [thread:$0]  (!%p1360_p7), %s1356_s24, 256, %s1358_s9, %s1364_s10, %s1162_s13, %s1162_s13, %s1163_s14  }
  0x70   : > { %p1475_p2 = scmp.ne.s32.totalorder %s1471_s8, 0 }
  0x71   : > { %s291_s11 = sand.u32 (!%p1475_p2), 1, %s1146_s25   ;;  %p1476_p6 = scmp.ne.s32.totalorder (!%p1475_p2), %s1470_s30, 0 }
  0x72   : > { %289 = sbr.rel (%p1475_p2) target bundleno = 1138 (0x472), region = 48  ;;  %s789_s16 = sshll.u32 (!%p1475_p2), %s291_s11, 4 }
  0x73   : > { %s292_s19 = scalar_lea.sflag (!%p1475_p2), [#allocation3], %s291_s11  ;;  %s295_s20 = scalar_lea.vmem (!%p1475_p2), [#allocation2], %s789_s16 }
  0x79   : > { %1129 = dma.done.wait (%p1476_p6), %s292_s19, 256  }
  0x7a   : > { %1131 = vsyncadd (%p1476_p6), %s292_s19, 4294967040  ;;  %p1477_p1 = scmp.ne.s32.totalorder %s1469_s29, 0 }
  0x7c   : > { %1133 = dma.done.wait (%p1477_p1), [#allocation5], 1152  }
  0x7d   : > { %1135 = vsyncadd (%p1477_p1), [#allocation5], 4294966144 }
  0x7e   : > { %1137 = dma.done.wait (%p1477_p1), [#allocation8], 1024  }
  0x7f   : > { %1139 = vsyncadd (%p1477_p1), [#allocation8], 4294966272  ;;  %v1164_v0 = vmov 0.0   ;;  %vm1165_vm0 = vmmov 0   ;;  %v965_v1 = vld [vmem:[#allocation4] sm:$0xff]   ;;  %v347_v3 = vld [vmem:[%s295_s20 + $0x8] sm:$0xff] }
  0x80   : > { %843 = vmatprep.subr.bf16.mxu0 %v1164_v0  ;;  %845 = vmatprep.mubr.msk.bf16.mxu0 %vm1165_vm0, %v1164_v0  ;;  %v346_v2 = vld [vmem:[%s295_s20] sm:$0xff]  ;;  %vm364_vm1 = vcmask 130048   ;;  %v966_v5 = vld [vmem:[#allocation6] sm:$0xff]   ;;  %v968_v7 = vld [vmem:[#allocation6 + $0x10] sm:$0xff]   ;;  %s793_s10 = sshll.u32 %s778_s28, 1  ;;  %vm679_vm6 = vcmask 64512  }
  0x81   : > { %849 = vmatprep.subr.bf16.mxu1 %v1164_v0  ;;  %865 = vmatprep.mubr.msk.bf16.mxu1 %vm1165_vm0, %v1164_v0  ;;  %v348_v4 = vpack.c.bf16 %v347_v3, %v346_v2  ;;  %v967_v6 = vld [vmem:[#allocation6 + $0x8] sm:$0xff]   ;;  %v969_v8 = vld [vmem:[#allocation6 + $0x18] sm:$0xff]   ;;  %v970_v9 = vld [vmem:[#allocation6 + $0x20] sm:$0xff]   ;;  %p340_p7 = scmp.lt.s32.totalorder %s793_s10, 3 }
  0x82   : > { %844 = vmatpush3.bf16.msra.mxu0 %v965_v1  ;;  %850 = vmatpush3.bf16.msra.mxu1 %v966_v5  ;;  %v971_v10 = vld [vmem:[#allocation6 + $0x28] sm:$0xff]   ;;  %v972_v11 = vld [vmem:[#allocation6 + $0x30] sm:$0xff]   ;;  %v973_v12 = vld [vmem:[#allocation6 + $0x38] sm:$0xff]  }
  0x83   : > { %869 = vmatprep.subr.bf16.mxu0 %v1164_v0  ;;  %851 = vmatprep.subr.bf16.mxu1 %v1164_v0  ;;  %v974_v13 = vld [vmem:[#allocation7] sm:$0xff]   ;;  %v975_v14 = vld [vmem:[#allocation7 + $0x8] sm:$0xff]   ;;  %v795_v15 = vld [vmem:[%s1459_s2] ss:$0 sm:$0xff]  ;;  %s1483_s10 = smov (!%p340_p7, %s793_s10), 3 }
  0x84   : > { %v976_v31 = vld [vmem:[#allocation7 + $0x10] sm:$0xff]   ;;  %v977_v32 = vld [vmem:[#allocation7 + $0x18] sm:$0xff]   ;;  %v978_v33 = vld [vmem:[#allocation7 + $0x20] sm:$0xff]   ;;  %s794_s18 = sshll.u32 %s1483_s10, 3 }
  0x85   : > { %846 = vmatmul.mubr.msk.bf16.vlgmr.msra.gmra.mrb[0].mxu0 %vm364_vm1, %v348_v4  ;;  %v979_v34 = vld [vmem:[#allocation7 + $0x28] sm:$0xff]   ;;  %v980_v35 = vld [vmem:[#allocation7 + $0x30] sm:$0xff]   ;;  %v981_v36 = vld [vmem:[#allocation7 + $0x38] sm:$0xff]   ;;  %s343_s15 = scalar_lea.vmem %s1464_s7, %s794_s18 }
  0x86   : > { %885 = vmatprep.mubr.msk.bf16.mxu0 %vm1165_vm0, %v1164_v0  ;;  %852 = vmatpush3.bf16.msra.mxu1 %v967_v6  ;;  %v800_v37 = vld [vmem:[%s1461_s4] ss:$0 sm:$0xff] }
  0x87   : > { %853 = vmatprep.subr.bf16.mxu1 %v1164_v0  ;;  %870 = vmatpush3.bf16.msra.mxu0 %v974_v13  ;;  %v811_v53 = vld [vmem:[%s1463_s6] ss:$0 sm:$0xff] }
  0x88   : > { %871 = vmatprep.subr.bf16.mxu0 %v1164_v0 }
  0x8a   : > { %854 = vmatpush3.bf16.msra.mxu1 %v968_v7 }
  0x8b   : > { %855 = vmatprep.subr.bf16.mxu1 %v1164_v0  ;;  %872 = vmatpush3.bf16.msra.mxu0 %v975_v14 }
  0x8c   : > { %873 = vmatprep.subr.bf16.mxu0 %v1164_v0 }
  0x8e   : > { %856 = vmatpush3.bf16.msra.mxu1 %v969_v8 }
  0x8f   : > { %857 = vmatprep.subr.bf16.mxu1 %v1164_v0  ;;  %874 = vmatpush3.bf16.msra.mxu0 %v976_v31 }
  0x90   : > { %875 = vmatprep.subr.bf16.mxu0 %v1164_v0 }
  0x92   : > { %858 = vmatpush3.bf16.msra.mxu1 %v970_v9 }
  0x93   : > { %859 = vmatprep.subr.bf16.mxu1 %v1164_v0  ;;  %876 = vmatpush3.bf16.msra.mxu0 %v977_v32 }
  0x94   : > { %877 = vmatprep.subr.bf16.mxu0 %v1164_v0 }
  0x96   : > { %860 = vmatpush3.bf16.msra.mxu1 %v971_v10 }
  0x97   : > { %861 = vmatprep.subr.bf16.mxu1 %v1164_v0  ;;  %878 = vmatpush3.bf16.msra.mxu0 %v978_v33 }
  0x98   : > { %879 = vmatprep.subr.bf16.mxu0 %v1164_v0 }
  0x9a   : > { %862 = vmatpush3.bf16.msra.mxu1 %v972_v11 }
  0x9b   : > { %863 = vmatprep.subr.bf16.mxu1 %v1164_v0  ;;  %880 = vmatpush3.bf16.msra.mxu0 %v979_v34 }
  0x9c   : > { %881 = vmatprep.subr.bf16.mxu0 %v1164_v0 }
  0x9e   : > { %864 = vmatpush3.bf16.msra.mxu1 %v973_v12 }
  0x9f   : > { %882 = vmatpush3.bf16.msra.mxu0 %v980_v35 }
  0xa0   : > { %883 = vmatprep.subr.bf16.mxu0 %v1164_v0 }
  0xa3   : > { %884 = vmatpush3.bf16.msra.mxu0 %v981_v36 }
 0x158   : > { %v402_v16 = vpop.f32.mrb[0].mxu0 }
 0x159   : > { %v403_v17 = vadd.f32 %v795_v15, %v402_v16  ;;  %v847_v18 = vpop.f32.mrb[1].mxu0 }
 0x15a   : > { %v405_v19 = vpop.f32.mrb[2].mxu0 }
 0x15b   : > { %v411_v20 = vmul.f32 1.442695, %v403_v17  ;;  %v406_v21 = vadd.f32 %v795_v15, %v405_v19  ;;  %v848_v22 = vpop.f32.mrb[3].mxu0  ;;  %vm409_vm2 = vcmp.gt.f32.partialorder %v403_v17, 0.0 }
 0x15d   : > { %982 = vpow2.f32 %v411_v20  ;;  %v413_v23 = vmul.f32 1.442695, %v406_v21  ;;  %vm410_vm3 = vcmp.gt.f32.partialorder %v406_v21, 0.0 }
 0x15f   : > { %984 = vpow2.f32 %v413_v23 }
 0x167   : > { %v983_v24 = vpop.eup %982 }
 0x168   : > { %v798_v25 = vadd.f32 -1.0, %v983_v24 }
 0x169   : > { %v985_v26 = vpop.eup %984 }
 0x16a   : > { %v799_v27 = vadd.f32 -1.0, %v985_v26  ;;  %v417_v28 = vsel %vm409_vm2, %v403_v17, %v798_v25 }
 0x16c   : > { %v418_v29 = vsel %vm410_vm3, %v406_v21, %v799_v27 }
 0x16d   : > { %v419_v30 = vpack.c.bf16 %v418_v29, %v417_v28 }
 0x16f   : > { %866 = vmatmul.mubr.bf16.vlgmr.msra.gmra.mrb[0].mxu1 %v419_v30 }
 0x242   : > { %v525_v38 = vpop.f32.mrb[0].mxu1 }
 0x243   : > { %v526_v39 = vadd.f32 %v800_v37, %v525_v38  ;;  %v867_v40 = vpop.f32.mrb[1].mxu1 }
 0x244   : > { %v528_v41 = vpop.f32.mrb[2].mxu1 }
 0x245   : > { %v534_v42 = vmul.f32 1.442695, %v526_v39  ;;  %v529_v43 = vadd.f32 %v800_v37, %v528_v41  ;;  %v868_v44 = vpop.f32.mrb[3].mxu1  ;;  %vm532_vm4 = vcmp.gt.f32.partialorder %v526_v39, 0.0 }
 0x247   : > { %986 = vpow2.f32 %v534_v42  ;;  %v536_v45 = vmul.f32 1.442695, %v529_v43  ;;  %vm533_vm5 = vcmp.gt.f32.partialorder %v529_v43, 0.0 }
 0x249   : > { %988 = vpow2.f32 %v536_v45 }
 0x251   : > { %v987_v46 = vpop.eup %986 }
 0x252   : > { %v809_v47 = vadd.f32 -1.0, %v987_v46 }
 0x253   : > { %v989_v48 = vpop.eup %988 }
 0x254   : > { %v810_v49 = vadd.f32 -1.0, %v989_v48  ;;  %v540_v50 = vsel %vm532_vm4, %v526_v39, %v809_v47 }
 0x256   : > { %v541_v51 = vsel %vm533_vm5, %v529_v43, %v810_v49 }
 0x257   : > { %v542_v52 = vpack.c.bf16 %v541_v51, %v540_v50 }
 0x259   : > { %886 = vmatmul.mubr.bf16.vlgmr.msra.gmra.mrb[4].mxu0 %v542_v52 }
 0x32c   : > { %v648_v54 = vpop.f32.mrb[4].mxu0 }
 0x32d   : > { %v649_v55 = vadd.f32 %v811_v53, %v648_v54  ;;  %v887_v56 = vpop.f32.mrb[5].mxu0 }
 0x32e   : > { %v651_v57 = vpop.f32.mrb[6].mxu0 }
 0x32f   : > { %655 = vmax.xlane.f32.xlu0 %v649_v55  ;;  %v888_v58 = vpop.f32.mrb[7].mxu0  ;;  %v652_v59 = vadd.f32 %v811_v53, %v651_v57 }
 0x333   : > { %657 = vmax.xlane.f32.xlu0 %v652_v59 }
 0x3bc   : > { %v656_v60 = vpop.xlane.xlu0 %655 }
 0x3bd   : > { %v659_v61 = vsub.f32 %v649_v55, %v656_v60 }
 0x3bf   : > { %v661_v62 = vmul.f32 1.442695, %v659_v61 }
 0x3c0   : > { %v658_v63 = vpop.xlane.xlu0 %657 }
 0x3c1   : > { %990 = vpow2.f32 %v661_v62  ;;  %v660_v0 = vsub.f32 %v652_v59, %v658_v63 }
 0x3c3   : > { %v663_v1 = vmul.f32 1.442695, %v660_v0 }
 0x3c5   : > { %992 = vpow2.f32 %v663_v1 }
 0x3cb   : > { %v991_v2 = vpop.eup %990 }
 0x3cc   : > { %665 = vadd.xlane.f32.xlu1 %v991_v2 }
 0x3cf   : > { %v993_v3 = vpop.eup %992 }
 0x3d0   : > { %667 = vadd.xlane.f32.xlu1 %v993_v3 }
 0x459   : > { %v666_v4 = vpop.xlane.xlu1 %665 }
 0x45a   : > { %994 = vrcp.f32 %v666_v4 }
 0x45d   : > { %v668_v5 = vpop.xlane.xlu1 %667 }
 0x45e   : > { %996 = vrcp.f32 %v668_v5 }
 0x464   : > { %v995_v6 = vpop.eup %994 }
 0x465   : > { %v671_v7 = vmul.f32 %v995_v6, %v666_v4 }
 0x467   : > { %v673_v8 = vsub.f32 2.0, %v671_v7 }
 0x468   : > { %v997_v9 = vpop.eup %996 }
 0x469   : > { %v675_v10 = vmul.f32 %v995_v6, %v673_v8  ;;  %v672_v11 = vmul.f32 %v997_v9, %v668_v5 }
 0x46b   : > { %v677_v12 = vmul.f32 %v991_v2, %v675_v10  ;;  %v674_v13 = vsub.f32 2.0, %v672_v11 }
 0x46d   : > { %680 = vst.msk [vmem:[%s343_s15] sm:$0xff] %vm679_vm6, %v677_v12  ;;  %v676_v14 = vmul.f32 %v997_v9, %v674_v13 }
 0x46f   : > { %v678_v15 = vmul.f32 %v993_v3, %v676_v14 }
 0x471   : > { %681 = vst.msk [vmem:[%s343_s15 + $0x8] sm:$0xff] %vm679_vm6, %v678_v15 }
 0x472 PF: > { %p19_p11 = scmp.ge.s32.totalorder %s1339_s21, 4   ;;  %s1478_s24 = smov %s1146_s25 }
 0x473   : > { %s1479_s25 = smov %s1150_s26  ;;  %s1480_s26 = smov %s1349_s17 }
 0x474   : > { %s1481_s27 = smov %s1339_s21  ;;  %21 = sbr.rel (!%p19_p11) target bundleno = 5 (0x5), region = 100 }
 0x47b   :  { %704 = vsyncpa [#allocation3], 1 }
 0x47c   :  { %706 = vsyncpa [#allocation3 + $0x1], 1 }
 0x47d   :  { %707 = vsyncpa [#allocation5], 1 }
 0x47e   :  { %708 = vsyncpa [#allocation8], 1 }

</bundles_post_ra>
